<compile_context>
chip_gen: v7x
topology: tpu7x:2x2x1
jax: 0.10.0
libtpu: 0.0.40
codegen_flags: <defaults>
</compile_context>

<pallas_src>
import functools

import jax
import jax.numpy as jnp
from jax import lax
from jax.experimental import pallas as pl
from jax.experimental.pallas import tpu as pltpu


@functools.cache
def _roll_is_numpy_convention() -> bool:
    """One-time tiny probe pinning down pltpu.roll's rotation direction."""
    def probe(x_ref, o_ref):
        o_ref[...] = pltpu.roll(x_ref[...], shift=1, axis=1)

    x = lax.broadcasted_iota(jnp.float32, (8, 128), 1)
    out = pl.pallas_call(
        probe, out_shape=jax.ShapeDtypeStruct((8, 128), jnp.float32))(x)
    # np.roll convention: result[i] = x[(i - shift) % n]  ->  out[0,0] == 127.
    return bool(out[0, 0] == 127.0)


def _bottleneck_kernel(x_ref, w1_ref, w2_ref, w3_ref, t1_ref, t2_ref, t3_ref,
                       o_ref, *, H, W, Cmid, roll_sign):
    HW = H * W
    x_f32 = x_ref[...]                                    # (Cin, HW) f32 (residual)
    x_bf = x_f32.astype(w1_ref.dtype)

    # --- conv1 (1x1, BN1 scale folded into w1) + shift + ReLU -----------------
    # (Cmid, Cin) @ (Cin, HW) -> (Cmid, HW), f32 accumulate, HW on lanes.
    y1 = jnp.dot(w1_ref[...], x_bf, preferred_element_type=jnp.float32)
    y1 = jnp.maximum(y1 + t1_ref[...], 0.0)               # t1: (Cmid, 1) broadcast

    # Lane-position helpers for the 3x3 boundary masks (computed once).
    pos = lax.broadcasted_iota(jnp.int32, (1, HW), 1)
    h_idx = pos // W
    w_idx = pos - h_idx * W

    # --- conv2 (3x3, pad=1, stride=1): roll-and-accumulate over the 9 taps ----
    acc = jnp.zeros((Cmid, HW), jnp.float32)
    for k in range(9):
        dy, dx = k // 3, k % 3
        ky, kx = dy - 1, dx - 1                            # tap offsets in {-1,0,1}
        off = ky * W + kx                                  # flat (row-major) offset
        if off == 0:
            tap = y1
        else:
            tap = pltpu.roll(y1, shift=(roll_sign * off) % HW, axis=1)
        conds = []
        if ky < 0:
            conds.append(h_idx >= 1)
        if ky > 0:
            conds.append(h_idx < H - 1)
        if kx < 0:
            conds.append(w_idx >= 1)
        if kx > 0:
            conds.append(w_idx < W - 1)
        if conds:
            m = conds[0]
            for c in conds[1:]:
                m = jnp.logical_and(m, c)
            tap = jnp.where(m, tap, 0.0)                   # zero wrap-around taps
        acc = acc + jnp.dot(w2_ref[k], tap.astype(w2_ref.dtype),
                            preferred_element_type=jnp.float32)
    y2 = jnp.maximum(acc + t2_ref[...], 0.0)               # (Cmid, HW) f32

    # --- conv3 (1x1) + shift + identity residual + ReLU (f32 epilogue) --------
    y3 = jnp.dot(w3_ref[...], y2.astype(w3_ref.dtype),
                 preferred_element_type=jnp.float32)       # (Cout, HW)
    o_ref[...] = jnp.maximum(y3 + t3_ref[...] + x_f32, 0.0)


@functools.partial(jax.jit, static_argnums=(2,))
def _bottleneck_forward_jit(x_nchw, params, roll_sign):
    N, Cin, H, W = x_nchw.shape
    HW = H * W
    w1, w2, w3 = params["w1"], params["w2"], params["w3"]
    Cmid = w1.shape[0]
    Cout = w3.shape[0]
    assert Cout == Cin, "identity residual requires in_channels == 4*out_channels"

    # Free metadata reshape (contiguous NCHW) -- no HBM transpose pass.
    x_flat = x_nchw.reshape(N, Cin, HW)

    def full(a):
        nd = a.ndim
        return pl.BlockSpec(a.shape, lambda b, _nd=nd: (0,) * _nd)

    kern = functools.partial(_bottleneck_kernel, H=H, W=W, Cmid=Cmid,
                             roll_sign=roll_sign)

    out_flat = pl.pallas_call(
        kern,
        out_shape=jax.ShapeDtypeStruct((N, Cout, HW), jnp.float32),
        grid_spec=pltpu.PrefetchScalarGridSpec(
            num_scalar_prefetch=0,
            grid=(N,),
            in_specs=[
                pl.BlockSpec((pl.Squeezed(), Cin, HW), lambda b: (b, 0, 0)),
                full(w1),                # (Cmid, Cin)       bf16, BN1 scale folded
                full(w2),                # (9, Cmid, Cmid)   bf16, BN2 scale folded
                full(w3),                # (Cout, Cmid)      bf16, BN3 scale folded
                full(params["t1"]),      # (Cmid, 1) f32
                full(params["t2"]),      # (Cmid, 1) f32
                full(params["t3"]),      # (Cout, 1) f32
            ],
            out_specs=pl.BlockSpec((pl.Squeezed(), Cout, HW), lambda b: (b, 0, 0)),
        ),
        compiler_params=pltpu.CompilerParams(
            dimension_semantics=("parallel",),       # batch over both TCs on v7x
            vmem_limit_bytes=32 * 1024 * 1024,       # raise (v6e) / tile (v7x) for real shapes
        ),
    )(x_flat, w1, w2, w3, params["t1"], params["t2"], params["t3"])

    return out_flat.reshape(N, Cout, H, W)           # free metadata reshape


def bottleneck_forward(x_nchw, params):
    """x_nchw: (N, Cin, H, W) float32.  Returns (N, Cout, H, W), Cout == Cin."""
    roll_sign = -1 if _roll_is_numpy_convention() else 1
    return _bottleneck_forward_jit(x_nchw, params, roll_sign)


def make_params(key, in_channels, out_channels, eps=1e-5, mxu_dtype=jnp.bfloat16):
    """Deterministic synthetic params matching Bottleneck(__init__) shapes."""
    exp = 4
    cmid, cout = out_channels, out_channels * exp
    ks = jax.random.split(key, 18)

    def rnd(k, shape, scale=0.1):
        return scale * jax.random.normal(k, shape, dtype=jnp.float32)

    # Conv weights in PyTorch layout (out, in, kh, kw).
    conv1_w = rnd(ks[0], (cmid, in_channels, 1, 1)); conv1_b = rnd(ks[1], (cmid,))
    conv2_w = rnd(ks[2], (cmid, cmid, 3, 3));        conv2_b = rnd(ks[3], (cmid,))
    conv3_w = rnd(ks[4], (cout, cmid, 1, 1));        conv3_b = rnd(ks[5], (cout,))

    def bn(kg, kb, km, kv, c):
        gamma = 1.0 + rnd(kg, (c,))
        beta = rnd(kb, (c,))
        mean = rnd(km, (c,))
        var = jnp.abs(rnd(kv, (c,))) + 0.5
        return gamma, beta, mean, var

    bn1 = bn(ks[6], ks[7], ks[8], ks[9], cmid)
    bn2 = bn(ks[10], ks[11], ks[12], ks[13], cmid)
    bn3 = bn(ks[14], ks[15], ks[16], ks[17], cout)

    def fold(gamma, beta, mean, var, conv_b):
        s = gamma / jnp.sqrt(var + eps)                 # BN(conv(x)+b) = s*conv(x)+t
        t = beta + (conv_b - mean) * s
        return s, t

    s1, t1 = fold(*bn1, conv1_b)
    s2, t2 = fold(*bn2, conv2_b)
    s3, t3 = fold(*bn3, conv3_b)

    # Fold BN scales into the conv weights, channel-first layouts, bf16 for MXU.
    w1 = (conv1_w[:, :, 0, 0] * s1[:, None]).astype(mxu_dtype)               # (Cmid, Cin)
    w2 = (jnp.transpose(conv2_w * s2[:, None, None, None], (2, 3, 0, 1))     # (kh,kw,co,ci)
          .reshape(9, cmid, cmid)).astype(mxu_dtype)                         # tap k = kh*3+kw
    w3 = (conv3_w[:, :, 0, 0] * s3[:, None]).astype(mxu_dtype)               # (Cout, Cmid)

    params = {"w1": w1, "w2": w2, "w3": w3,
              "t1": t1.reshape(cmid, 1), "t2": t2.reshape(cmid, 1),
              "t3": t3.reshape(cout, 1)}
    raw = dict(conv1_w=conv1_w, conv1_b=conv1_b, conv2_w=conv2_w, conv2_b=conv2_b,
               conv3_w=conv3_w, conv3_b=conv3_b, bn1=bn1, bn2=bn2, bn3=bn3)
    return params, raw


def bottleneck_reference(x, raw, eps=1e-5):
    """Pure-JAX NCHW reference (eval-mode BN, f32) for validation."""
    def conv(x, w, b, pad):
        y = lax.conv_general_dilated(
            x, w, window_strides=(1, 1), padding=[(pad, pad), (pad, pad)],
            dimension_numbers=("NCHW", "OIHW", "NCHW"))
        return y + b[None, :, None, None]

    def bn(x, p):
        g, b, m, v = p
        return (x - m[None, :, None, None]) / jnp.sqrt(v[None, :, None, None] + eps) \
            * g[None, :, None, None] + b[None, :, None, None]

    identity = x
    y = jax.nn.relu(bn(conv(x, raw["conv1_w"], raw["conv1_b"], 0), raw["bn1"]))
    y = jax.nn.relu(bn(conv(y, raw["conv2_w"], raw["conv2_b"], 1), raw["bn2"]))
    y = bn(conv(y, raw["conv3_w"], raw["conv3_b"], 0), raw["bn3"])
    return jax.nn.relu(y + identity)


if __name__ == "__main__":
    # i_downsample=None, stride=1 requires in_channels == out_channels * 4.
    N, out_channels = 2, 4
    in_channels = out_channels * 4                  # 16
    H = W = 16                                      # H*W = 256 -> lane-dense tiles

    key = jax.random.PRNGKey(0)
    kx, kp = jax.random.split(key)
    x = jax.random.normal(kx, (N, in_channels, H, W), dtype=jnp.float32)

    params, raw = make_params(kp, in_channels, out_channels)

    out = jax.block_until_ready(bottleneck_forward(x, params))
    ref = jax.block_until_ready(bottleneck_reference(x, raw))

    assert out.shape == (N, in_channels, H, W)
    err = float(jnp.max(jnp.abs(out - ref)))
    # bf16 MXU operands with f32 accumulation/epilogue -> loosened tolerance;
    # structural bugs (wrong tap/mask/roll) would produce O(0.1-1) errors.
    assert err < 5e-2, f"mismatch: max abs err {err}"

    print("KERNEL_OK")
</pallas_src>

<mosaic_0001>
module attributes {stable_mosaic.version = 11 : i64} {
  func.func @probe(%arg0: memref<8x128xf32, #tpu.memory_space<vmem>>, %arg1: memref<8x128xf32, #tpu.memory_space<vmem>>) attributes {dimension_semantics = [], scalar_prefetch = 0 : i64, scratch_operands = 0 : i64, tpu.core_type = #tpu.core_type<tc>} {
    %c0 = arith.constant 0 : index
    %c0_0 = arith.constant 0 : index
    %0 = vector.load %arg0[%c0, %c0_0] : memref<8x128xf32, #tpu.memory_space<vmem>>, vector<8x128xf32>
    %c1_i32 = arith.constant 1 : i32
    %1 = tpu.dynamic_rotate %0 by %c1_i32 dim 1 : vector<8x128xf32>, i32 -> vector<8x128xf32>
    %c0_1 = arith.constant 0 : index
    %c0_2 = arith.constant 0 : index
    %2 = vector.load %arg1[%c0_1, %c0_2] : memref<8x128xf32, #tpu.memory_space<vmem>>, vector<8x128xf32>
    tpu.vector_store %arg1[%c0_1, %c0_2], %1 {strides = array<i32>} : memref<8x128xf32, #tpu.memory_space<vmem>>, vector<8x128xf32>,
    return
  }
}

</mosaic_0001>

<bundles_post_ra>
// kernel: tpu_custom_call.1
= control target key start
LH: loop header
LB: loop body
LE: loop exit
PB: predicated region body
PF: predicated region fallthrough
CT: control target
= control target key end

     0   :  { %6 = vsyncpa [#allocation3], 0  ;;  %s128_s0 = inlined_call_operand.hbm [shape: f32[8,128], index: 0, kind: input, shape index: {}]   ;;  %s129_s1 = inlined_call_operand.hbm [shape: f32[8,128], index: 1, kind: output, shape index: {}]  }
   0x1   :  { %7 = vsyncpa [#allocation4], 0  ;;  %s91_s6 = smov [#allocation2]   ;;  %s43_s10 = scalar_lea.hbm %s128_s0, 128 }
   0x2   :  { %s14_s7 = sshll.u32 %s91_s6, 4  ;;  %p44_p0 = scmp.ne.s32.totalorder %s128_s0, %s43_s10  ;;  %s15_s7 = int_to_ptr.vmem [resolvable:$true] %s14_s7 }
   0x3   :  { %p47_p1 = scmp.lt.u32.totalorder %s43_s10, %s128_s0 }
   0x5   :  { %p49_p2 = pnand %p47_p1, %p44_p0 }
   0x7   :  { %52 = shalt.err (!%p49_p2)
}
   0x8   :  { %s53_s15 = scalar_lea.vmem %s15_s7, 128  ;;  %p58_p4 = scmp.lt.s32.totalorder %s15_s7, %s15_s7 }
   0x9   :  { %p54_p3 = scmp.ne.s32.totalorder %s15_s7, %s53_s15  ;;  %p59_p5 = scmp.lt.s32.totalorder %s53_s15, %s53_s15 }
   0xb   :  { %p60_p6 = por %p59_p5, %p58_p4 }
   0xd   :  { %p61_p7 = pnand %p60_p6, %p54_p3 }
   0xf   :  { %64 = shalt.err (!%p61_p7)
}
  0x10   :  { %17 = dma.hbm_to_vmem [thread:$0]  %s128_s0, 128, %s15_s7, [#allocation3]  }
  0x11   :  { %87 = dma.done.wait [#allocation3], 128  }
  0x12   :  { %88 = vsyncadd [#allocation3], 4294967168  ;;  %v21_v0 = vld [vmem:[#allocation2] sm:$0xff]  ;;  %s92_s18 = smov 1   ;;  %s93_s19 = smov [#allocation5]  }
  0x13   :  { %22 = vrot.lane.b32.xlu0 %v21_v0, %s92_s18  ;;  %s31_s20 = sshll.u32 %s93_s19, 4  ;;  %s32_s20 = int_to_ptr.vmem [resolvable:$true] %s31_s20 }
  0x14   :  { %s65_s21 = scalar_lea.vmem %s32_s20, 128  ;;  %p70_p9 = scmp.lt.s32.totalorder %s32_s20, %s32_s20 }
  0x15   :  { %p66_p8 = scmp.ne.s32.totalorder %s32_s20, %s65_s21  ;;  %p71_p10 = scmp.lt.s32.totalorder %s65_s21, %s65_s21 }
  0x17   :  { %p72_p11 = por %p71_p10, %p70_p9 }
  0x19   :  { %p73_p12 = pnand %p72_p11, %p66_p8 }
  0x85   :  { %v23_v1 = vpop.permute.xlu0 %22 }
  0x86   :  { %24 = vst [vmem:[#allocation5] sm:$0xff] %v23_v1 }
  0x87   :  { %76 = shalt.err (!%p73_p12)
}
  0x88   :  { %s77_s0 = scalar_lea.hbm %s129_s1, 128 }
  0x89   :  { %p78_p13 = scmp.ne.s32.totalorder %s129_s1, %s77_s0  ;;  %p81_p0 = scmp.lt.u32.totalorder %s77_s0, %s129_s1 }
  0x8b   :  { %p83_p1 = pnand %p81_p0, %p78_p13 }
  0x8d   :  { %86 = shalt.err (!%p83_p1)
}
  0x8e   :  { %34 = dma.vmem_to_hbm [thread:$0]  %s32_s20, 128, %s129_s1, [#allocation4]  }
  0x8f   :  { %89 = dma.done.wait [#allocation4], 128  }
  0x90   :  { %90 = vsyncadd [#allocation4], 4294967168 }
  0x91   :  { %38 = vsyncpa [#allocation3], 1 }
  0x92   :  { %39 = vsyncpa [#allocation4], 1 }

</bundles_post_ra>
